<compile_context>
chip_gen: v7x
topology: tpu7x:2x2x1
jax: 0.10.0
libtpu: 0.0.40
codegen_flags: <defaults>
</compile_context>

<pallas_src>
import functools

import jax
import jax.numpy as jnp
from jax.experimental import pallas as pl
from jax.experimental.pallas import tpu as pltpu


def _round_up(x, m):
    return (x + m - 1) // m * m


def _pick_lane_block(hwp, max_lanes):
    """Largest multiple of 128 that divides hwp and is <= max_lanes."""
    q = hwp // 128
    best = 1
    for d in range(1, q + 1):
        if q % d == 0 and 128 * d <= max_lanes:
            best = d
    return 128 * best


def _rc_kernel(p_ref, w_ref, b_ref, o_ref, *, activated):
    # p_ref: (K2C, L)           im2col patches, L lanes (multiple of 128)
    # w_ref: (C_out_p, K2C)     flattened conv weight (tap order matches patches)
    # b_ref: (C_out_p, 1)       conv bias (zeros when the module has bias=False)
    # o_ref: (nb, C_out_p, L // nb)
    y = jnp.dot(w_ref[...], p_ref[...],
                preferred_element_type=jnp.float32,
                precision=jax.lax.Precision.HIGHEST)
    y = y + b_ref[...]                       # VPU, broadcast over lanes
    if activated:
        y = jnp.tanh(y)                      # EUP
    y = y.astype(o_ref.dtype)
    nb, _, lb = o_ref.shape
    for n in range(nb):                      # lane-aligned static slices (lb % 128 == 0)
        o_ref[n] = y[:, n * lb:(n + 1) * lb]


def rc_forward(x, weight, bias=None, *, pad_size=1, activated=False,
               max_block_lanes=16384):
    """RC.forward: reflection pad -> conv2d (stride 1) -> optional tanh.

    x:      (N, C_in, H, W) float32
    weight: (C_out, C_in, KH, KW)
    bias:   (C_out,) or None
    """
    N, C_in, H, W = x.shape
    C_out, _, KH, KW = weight.shape
    if pad_size > min(H, W) - 1:
        raise ValueError("ReflectionPad2d requires pad_size <= min(H, W) - 1")
    H_out = H + 2 * pad_size - KH + 1
    W_out = W + 2 * pad_size - KW + 1
    HW = H_out * W_out
    K2C = C_in * KH * KW

    # --- wrapper glue: reflection pad + im2col (tiny; fuses into few XLA ops) ---
    # TODO(synk): for the tiny-shape regime, pad + im2col could move into the
    # kernel (VMEM scratch + 9 static taps) to cut the 9x HBM expansion.
    xp = jnp.pad(x.astype(jnp.float32),
                 ((0, 0), (0, 0), (pad_size, pad_size), (pad_size, pad_size)),
                 mode="reflect")
    # Move batch next to the lane axis BEFORE the 9x tap expansion (cheap).
    xpt = jnp.transpose(xp, (1, 0, 2, 3))            # (C_in, N, Hp, Wp)
    taps = [xpt[:, :, dy:dy + H_out, dx:dx + W_out]
            for dy in range(KH) for dx in range(KW)]
    # K ordering (c, dy, dx) matches weight.reshape(C_out, C_in*KH*KW).
    patches = jnp.stack(taps, axis=1).reshape(K2C, N, HW)

    # Lane/sublane alignment: HW -> multiple of 128, C_out -> multiple of 8.
    HWp = _round_up(HW, 128)
    C_out_p = _round_up(C_out, 8)
    if HWp != HW:
        patches = jnp.pad(patches, ((0, 0), (0, 0), (0, HWp - HW)))
    patches = patches.reshape(K2C, N * HWp)          # folded lane axis (batch-major)

    w2 = weight.reshape(C_out, K2C).astype(jnp.float32)
    b2 = (bias.astype(jnp.float32) if bias is not None
          else jnp.zeros((C_out,), jnp.float32)).reshape(C_out, 1)
    if C_out_p != C_out:
        w2 = jnp.pad(w2, ((0, C_out_p - C_out), (0, 0)))
        b2 = jnp.pad(b2, ((0, C_out_p - C_out), (0, 0)))

    kernel = functools.partial(_rc_kernel, activated=activated)
    out_shape = jax.ShapeDtypeStruct((N, C_out_p, HWp), jnp.float32)

    if N * HWp <= max_block_lanes:
        # Small/medium shapes: ONE kernel invocation, one wide MXU matmul over
        # all batch elements (no per-grid-step overhead).
        out = pl.pallas_call(
            kernel,
            out_shape=out_shape,
            grid_spec=pltpu.PrefetchScalarGridSpec(
                num_scalar_prefetch=0,
                grid=(1,),
                in_specs=[
                    pl.BlockSpec((K2C, N * HWp), lambda i: (0, 0)),
                    pl.BlockSpec((C_out_p, K2C), lambda i: (0, 0)),
                    pl.BlockSpec((C_out_p, 1), lambda i: (0, 0)),
                ],
                out_specs=pl.BlockSpec((N, C_out_p, HWp), lambda i: (0, 0, 0)),
            ),
            compiler_params=pltpu.CompilerParams(
                dimension_semantics=("arbitrary",)),
        )(patches, w2, b2)
    else:
        # Large spatial sizes: tile the per-batch lane axis so double-buffered
        # blocks stay within VMEM; (N, tiles) parallel grid also keeps both
        # v7x TensorCores busy.
        lane_block = _pick_lane_block(HWp, max_block_lanes)
        tiles = HWp // lane_block
        out = pl.pallas_call(
            kernel,
            out_shape=out_shape,
            grid_spec=pltpu.PrefetchScalarGridSpec(
                num_scalar_prefetch=0,
                grid=(N, tiles),
                in_specs=[
                    pl.BlockSpec((K2C, lane_block),
                                 lambda n, t: (0, n * tiles + t)),
                    pl.BlockSpec((C_out_p, K2C), lambda n, t: (0, 0)),
                    pl.BlockSpec((C_out_p, 1), lambda n, t: (0, 0)),
                ],
                out_specs=pl.BlockSpec((1, C_out_p, lane_block),
                                       lambda n, t: (n, 0, t)),
            ),
            compiler_params=pltpu.CompilerParams(
                dimension_semantics=("parallel", "parallel")),
        )(patches, w2, b2)

    if C_out_p != C_out or HWp != HW:
        out = out[:, :C_out, :HW]
    return out.reshape(N, C_out, H_out, W_out)


def rc_reference(x, weight, bias=None, *, pad_size=1, activated=False):
    """Pure-JAX reference mirroring the PyTorch RC module."""
    xp = jnp.pad(x, ((0, 0), (0, 0), (pad_size, pad_size), (pad_size, pad_size)),
                 mode="reflect")
    y = jax.lax.conv_general_dilated(
        xp, weight, window_strides=(1, 1), padding="VALID",
        dimension_numbers=("NCHW", "OIHW", "NCHW"),
        precision=jax.lax.Precision.HIGHEST)
    if bias is not None:
        y = y + bias.reshape(1, -1, 1, 1)
    return jnp.tanh(y) if activated else y


if __name__ == "__main__":
    # Small shapes consistent with the module: batch=2, in_ch=4, out_ch=8, spatial=16x16.
    N, C_in, C_out, H, W = 2, 4, 8, 16, 16

    key = jax.random.PRNGKey(0)
    kx, kw, kb = jax.random.split(key, 3)

    x = jax.random.normal(kx, (N, C_in, H, W), dtype=jnp.float32)
    weight = 0.1 * jax.random.normal(kw, (C_out, C_in, 3, 3), dtype=jnp.float32)
    bias = 0.1 * jax.random.normal(kb, (C_out,), dtype=jnp.float32)

    # Exercise both module configurations: activated=False (pad->conv->bias)
    # and activated=True (... -> tanh).
    for activated in (False, True):
        out = jax.block_until_ready(rc_forward(x, weight, bias, activated=activated))
        ref = jax.block_until_ready(rc_reference(x, weight, bias, activated=activated))
        assert out.shape == (N, C_out, H, W), out.shape
        err = float(jnp.max(jnp.abs(out - ref)))
        assert jnp.allclose(out, ref, atol=1e-5, rtol=1e-5), err

    print("KERNEL_OK")
</pallas_src>

<mosaic_0001>
module attributes {stable_mosaic.version = 11 : i64} {
  func.func @_rc_kernel(%arg0: i32, %arg1: memref<36x512xf32, #tpu.memory_space<vmem>>, %arg2: memref<8x36xf32, #tpu.memory_space<vmem>>, %arg3: memref<8x1xf32, #tpu.memory_space<vmem>>, %arg4: memref<2x8x256xf32, #tpu.memory_space<vmem>>) attributes {dimension_semantics = [#tpu.dimension_semantics<arbitrary>], iteration_bounds = array<i64: 1>, scalar_prefetch = 0 : i64, scratch_operands = 0 : i64, tpu.core_type = #tpu.core_type<tc>, window_params = [{pipeline_mode = #tpu.pipeline_mode<synchronous>, transform_indices = @transform_0, window_bounds = array<i64: 36, 512>}, {pipeline_mode = #tpu.pipeline_mode<synchronous>, transform_indices = @transform_1, window_bounds = array<i64: 8, 36>}, {pipeline_mode = #tpu.pipeline_mode<synchronous>, transform_indices = @transform_2, window_bounds = array<i64: 8, 1>}, {pipeline_mode = #tpu.pipeline_mode<synchronous>, transform_indices = @transform_3, window_bounds = array<i64: 2, 8, 256>}]} {
    %c0 = arith.constant 0 : index
    %c0_0 = arith.constant 0 : index
    %0 = vector.load %arg2[%c0, %c0_0] : memref<8x36xf32, #tpu.memory_space<vmem>>, vector<8x36xf32>
    %c0_1 = arith.constant 0 : index
    %c0_2 = arith.constant 0 : index
    %1 = vector.load %arg1[%c0_1, %c0_2] : memref<36x512xf32, #tpu.memory_space<vmem>>, vector<36x512xf32>
    %cst = arith.constant dense<0.000000e+00> : vector<8x512xf32>
    %2 = tpu.matmul %0, %1, %cst {dimension_numbers = #tpu.dot_dimension_numbers<[1], [0], [0], [1], [0, 0, 1, 1], [], []>, precision = #tpu.contract_precision<fp32>} : vector<8x36xf32>, vector<36x512xf32>, vector<8x512xf32> -> vector<8x512xf32>
    %c0_3 = arith.constant 0 : index
    %c0_4 = arith.constant 0 : index
    %3 = vector.load %arg3[%c0_3, %c0_4] : memref<8x1xf32, #tpu.memory_space<vmem>>, vector<8x1xf32>
    %4 = vector.broadcast %3 : vector<8x1xf32> to vector<8x512xf32>
    %5 = arith.addf %2, %4 : vector<8x512xf32>
    %6 = vector.extract_strided_slice %5 {offsets = [0, 0], sizes = [8, 256], strides = [1, 1]} : vector<8x512xf32> to vector<8x256xf32>
    %c0_5 = arith.constant 0 : index
    %c0_6 = arith.constant 0 : index
    %c0_7 = arith.constant 0 : index
    %7 = vector.load %arg4[%c0_5, %c0_6, %c0_7] : memref<2x8x256xf32, #tpu.memory_space<vmem>>, vector<1x8x256xf32>
    %8 = vector.shape_cast %7 : vector<1x8x256xf32> to vector<8x256xf32>
    %9 = vector.shape_cast %6 : vector<8x256xf32> to vector<1x8x256xf32>
    tpu.vector_store %arg4[%c0_5, %c0_6, %c0_7], %9 {strides = array<i32>} : memref<2x8x256xf32, #tpu.memory_space<vmem>>, vector<1x8x256xf32>,
    %10 = vector.extract_strided_slice %5 {offsets = [0, 256], sizes = [8, 256], strides = [1, 1]} : vector<8x512xf32> to vector<8x256xf32>
    %c1 = arith.constant 1 : index
    %c0_8 = arith.constant 0 : index
    %c0_9 = arith.constant 0 : index
    %11 = vector.load %arg4[%c1, %c0_8, %c0_9] : memref<2x8x256xf32, #tpu.memory_space<vmem>>, vector<1x8x256xf32>
    %12 = vector.shape_cast %11 : vector<1x8x256xf32> to vector<8x256xf32>
    %13 = vector.shape_cast %10 : vector<8x256xf32> to vector<1x8x256xf32>
    tpu.vector_store %arg4[%c1, %c0_8, %c0_9], %13 {strides = array<i32>} : memref<2x8x256xf32, #tpu.memory_space<vmem>>, vector<1x8x256xf32>,
    return
  }
  func.func @transform_0(%arg0: i32) -> (i32, i32) {
    %c0_i32 = arith.constant 0 : i32
    %c0_i32_0 = arith.constant 0 : i32
    %c0_i32_1 = arith.constant 0 : i32
    return %c0_i32, %c0_i32_0 : i32, i32
  }
  func.func @transform_1(%arg0: i32) -> (i32, i32) {
    %c0_i32 = arith.constant 0 : i32
    %c0_i32_0 = arith.constant 0 : i32
    %c0_i32_1 = arith.constant 0 : i32
    return %c0_i32, %c0_i32_0 : i32, i32
  }
  func.func @transform_2(%arg0: i32) -> (i32, i32) {
    %c0_i32 = arith.constant 0 : i32
    %c0_i32_0 = arith.constant 0 : i32
    %c0_i32_1 = arith.constant 0 : i32
    return %c0_i32, %c0_i32_0 : i32, i32
  }
  func.func @transform_3(%arg0: i32) -> (i32, i32, i32) {
    %c0_i32 = arith.constant 0 : i32
    %c0_i32_0 = arith.constant 0 : i32
    %c0_i32_1 = arith.constant 0 : i32
    %c0_i32_2 = arith.constant 0 : i32
    return %c0_i32, %c0_i32_0, %c0_i32_1 : i32, i32, i32
  }
}

</mosaic_0001>

<bundles_post_ra>
// kernel: tpu_custom_call.1
= control target key start
LH: loop header
LB: loop body
LE: loop exit
PB: predicated region body
PF: predicated region fallthrough
CT: control target
= control target key end

     0   :  { %8 = vsyncpa [#allocation3], 0  ;;  %s1757_s0 = inlined_call_operand.hbm [shape: f32[36,512], index: 0, kind: input, shape index: {}]   ;;  %s1758_s1 = inlined_call_operand.vmem [shape: f32[8,36], index: 1, kind: input, shape index: {}]   ;;  %s1759_s2 = inlined_call_operand.vmem [shape: f32[8,1], index: 2, kind: input, shape index: {}]   ;;  %s1760_s3 = inlined_call_operand.hbm [shape: f32[2,8,256], index: 3, kind: output, shape index: {}]  }
   0x1   :  { %9 = vsyncpa [#allocation4], 0  ;;  %s1410_s12 = smov [#allocation2]   ;;  %s1362_s16 = scalar_lea.hbm %s1757_s0, 2560 }
   0x2   :  { %s15_s13 = sshll.u32 %s1410_s12, 4  ;;  %p1363_p0 = scmp.ne.s32.totalorder %s1757_s0, %s1362_s16  ;;  %s16_s13 = int_to_ptr.vmem [resolvable:$true] %s15_s13 }
   0x3   :  { %p1366_p1 = scmp.lt.u32.totalorder %s1362_s16, %s1757_s0 }
   0x5   :  { %p1368_p2 = pnand %p1366_p1, %p1363_p0 }
   0x7   :  { %1371 = shalt.err (!%p1368_p2)
}
   0x8   :  { %s1372_s21 = scalar_lea.vmem %s16_s13, 2560  ;;  %p1377_p4 = scmp.lt.s32.totalorder %s16_s13, %s16_s13 }
   0x9   :  { %p1373_p3 = scmp.ne.s32.totalorder %s16_s13, %s1372_s21  ;;  %p1378_p5 = scmp.lt.s32.totalorder %s1372_s21, %s1372_s21 }
   0xb   :  { %p1379_p6 = por %p1378_p5, %p1377_p4 }
   0xd   :  { %p1380_p7 = pnand %p1379_p6, %p1373_p3 }
   0xf   :  { %1383 = shalt.err (!%p1380_p7)
}
  0x10   :  { %s1411_s22 = smov 512   ;;  %s1412_s23 = smov 32  }
  0x11   :  { %21 = dma.hbm_to_vmem [thread:$0]  %s1757_s0, 2560, %s16_s13, [#allocation3], %s1411_s22, %s1411_s22, %s1412_s23  }
  0x12   :  { %1406 = dma.done.wait [#allocation3], 2560  }
  0x13   :  { %1407 = vsyncadd [#allocation3], 4294964736  ;;  %v1413_v0 = vmov 0.0   ;;  %v1414_v1 = vmov 0   ;;  %v31_v2 = vld [vmem:[#allocation2 + $0x8] sm:$0xff]  ;;  %v33_v4 = vld [vmem:[#allocation2 + $0x18] sm:$0xff] }
  0x14   :  { %147 = vmatprep.mubr.f32.mxu0 %v1413_v0  ;;  %716 = vmatprep.mubr.f32.mxu1 %v1413_v0  ;;  %v35_v3 = vld [vmem:[#allocation2 + $0x28] sm:$0xff]  ;;  %vm60_vm0 = vcmask 1043456   ;;  %v73_v5 = vand.u32 4294901760, %v31_v2  ;;  %v37_v7 = vld [vmem:[#allocation2 + $0x38] sm:$0xff]  ;;  %v642_v8 = vand.u32 4294901760, %v33_v4  ;;  %v30_v9 = vld [vmem:[#allocation2] sm:$0xff] }
  0x15   :  { %1361 = vset.pattern.permute.xlu0 %v1414_v1  ;;  %v77_v6 = vand.u32 4294901760, %v35_v3  ;;  %v34_v10 = vld [vmem:[#allocation2 + $0x20] sm:$0xff]  ;;  %v646_v11 = vand.u32 4294901760, %v37_v7  ;;  %v75_v12 = vand.u32 4294901760, %v30_v9  ;;  %v32_v14 = vld [vmem:[#allocation2 + $0x10] sm:$0xff]  ;;  %v39_v16 = vld [vmem:[#allocation2 + $0x48] sm:$0xff] }
  0x16   :  { %v79_v13 = vand.u32 4294901760, %v34_v10  ;;  %v36_v15 = vld [vmem:[#allocation2 + $0x30] sm:$0xff]  ;;  %v1454_v18 = vsub.f32 %v31_v2, %v73_v5  ;;  %v1458_v20 = vsub.f32 %v33_v4, %v642_v8  ;;  %v43_v21 = vld [vmem:[#allocation2 + $0x68] sm:$0xff]  ;;  %v41_v22 = vld [vmem:[#allocation2 + $0x58] sm:$0xff]  ;;  %vm56_vm1 = vcmask 293888  }
  0x17   :  { %v1452_v17 = vpack.c.bf16 %v77_v6, %v73_v5  ;;  %v1456_v19 = vsub.f32 %v35_v3, %v77_v6  ;;  %v45_v23 = vld [vmem:[#allocation2 + $0x78] sm:$0xff]  ;;  %v1460_v24 = vpack.c.bf16 %v646_v11, %v642_v8  ;;  %v1462_v25 = vsub.f32 %v37_v7, %v646_v11  ;;  %v38_v28 = vld [vmem:[#allocation2 + $0x40] sm:$0xff]  ;;  %v40_v38 = vld [vmem:[#allocation2 + $0x50] sm:$0xff] }
  0x18   :  { %v1464_v26 = vpack.c.bf16 %v79_v13, %v75_v12  ;;  %v1466_v27 = vsub.f32 %v30_v9, %v75_v12  ;;  %v1469_v29 = vsub.f32 %v34_v10, %v79_v13  ;;  %v644_v30 = vand.u32 4294901760, %v32_v14  ;;  %v42_v33 = vld [vmem:[#allocation2 + $0x60] sm:$0xff]  ;;  %v44_v39 = vld [vmem:[#allocation2 + $0x70] sm:$0xff]  ;;  %v47_v44 = vld [vmem:[#allocation2 + $0x88] sm:$0xf] }
  0x19   :  { %1234 = vmatprep.subr.bf16.mxu0 %v1452_v17  ;;  %v648_v31 = vand.u32 4294901760, %v36_v15  ;;  %v81_v32 = vand.u32 4294901760, %v39_v16  ;;  %1282 = vmatprep.subr.bf16.mxu1 %v1460_v24  ;;  %v85_v34 = vand.u32 4294901760, %v43_v21  ;;  %v650_v35 = vand.u32 4294901760, %v41_v22  ;;  %v49_v45 = vld [vmem:[#allocation2 + $0x98] sm:$0xf] }
  0x1a   :  { %1236 = vmatpush1.bf16.msra.mxu0 %v1464_v26  ;;  %v654_v36 = vand.u32 4294901760, %v45_v23  ;;  %v83_v37 = vand.u32 4294901760, %v38_v28  ;;  %v1475_v41 = vsub.f32 %v32_v14, %v644_v30  ;;  %v46_v46 = vld [vmem:[#allocation2 + $0x80] sm:$0xf]  ;;  %v87_v53 = vand.u32 4294901760, %v42_v33 }
  0x1b   :  { %v1473_v40 = vpack.c.bf16 %v648_v31, %v644_v30  ;;  %v1477_v42 = vsub.f32 %v36_v15, %v648_v31  ;;  %v1479_v43 = vsub.f32 %v39_v16, %v81_v32  ;;  %v1481_v47 = vpack.c.bf16 %v85_v34, %v81_v32  ;;  %v50_v51 = vld [vmem:[%s1759_s2] sm:$0xff]  ;;  %v48_v60 = vld [vmem:[#allocation2 + $0x90] sm:$0xf] }
  0x1c   :  { %v1483_v48 = vsub.f32 %v43_v21, %v85_v34  ;;  %v1485_v49 = vpack.c.bf16 %v654_v36, %v650_v35  ;;  %v1487_v50 = vsub.f32 %v41_v22, %v650_v35  ;;  %v1493_v52 = vsub.f32 %v45_v23, %v654_v36  ;;  %53 = vperm.xlu0 %1361, %v50_v51   ;;  %v29_v2 = vld [vmem:[%s1758_s1] sm:$0xff]  ;;  %s1415_s1 = smov [#allocation5]  }
  0x1d   :  { %1284 = vmatpush1.bf16.msra.mxu1 %v1473_v40  ;;  %v1495_v54 = vsub.f32 %v38_v28, %v83_v37  ;;  %v652_v55 = vand.u32 4294901760, %v40_v38  ;;  %1238 = vmatprep.subr.bf16.mxu0 %v1481_v47  ;;  %v656_v56 = vand.u32 4294901760, %v44_v39  ;;  %v1500_v57 = vsel %vm60_vm0, %v47_v44, 0  ;;  %s1221_s28 = sshll.u32 %s1415_s1, 4  ;;  %s1222_s28 = int_to_ptr.vmem [resolvable:$true] %s1221_s28 }
  0x1e   :  { %1286 = vmatprep.subr.bf16.mxu1 %v1485_v49  ;;  %v1503_v58 = vsel %vm60_vm0, %v49_v45, 0  ;;  %v62_v59 = vsel %vm60_vm0, %v46_v46, 0  ;;  %v1506_v61 = vpack.c.bf16 %v87_v53, %v83_v37  ;;  %v1508_v62 = vsub.f32 %v42_v33, %v87_v53  ;;  %s1384_s29 = scalar_lea.vmem %s1222_s28, 512  ;;  %p1389_p9 = scmp.lt.s32.totalorder %s1222_s28, %s1222_s28 }
  0x1f   :  { %v1510_v63 = vsub.f32 %v40_v38, %v652_v55  ;;  %v1513_v1 = vand.u32 4294901760, %v1500_v57  ;;  %v1518_v3 = vpack.c.bf16 %v656_v56, %v652_v55  ;;  %v1520_v4 = vsub.f32 %v44_v39, %v656_v56  ;;  %p1385_p8 = scmp.ne.s32.totalorder %s1222_s28, %s1384_s29  ;;  %p1390_p10 = scmp.lt.s32.totalorder %s1384_s29, %s1384_s29 }
  0x20   :  { %v1523_v5 = vand.u32 4294901760, %v1503_v58  ;;  %v1525_v6 = vand.u32 4294901760, %v62_v59  ;;  %1240 = vmatpush1.bf16.msra.mxu0 %v1506_v61  ;;  %v68_v7 = vsel %vm60_vm0, %v48_v60, 0  ;;  %v161_v8 = vand.u32 4294901760, %v1454_v18 }
  0x21   :  { %v173_v9 = vand.u32 4294901760, %v1456_v19  ;;  %v730_v10 = vand.u32 4294901760, %v1458_v20  ;;  %1288 = vmatpush1.bf16.msra.mxu1 %v1518_v3  ;;  %90 = vmatprep.subr.mxu0 %v1513_v1  ;;  %v1537_v12 = vand.u32 4294901760, %v68_v7  ;;  %v742_v13 = vand.u32 4294901760, %v1462_v25  ;;  %p1391_p11 = por %p1390_p10, %p1389_p9 }
  0x22   :  { %v1535_v11 = vsub.f32 %v62_v59, %v1525_v6  ;;  %v58_v14 = vsel %vm56_vm1, %v29_v2, 0  ;;  %659 = vmatprep.subr.mxu1 %v1523_v5  ;;  %v162_v15 = vsub.f32 %v1454_v18, %v161_v8  ;;  %v167_v30 = vand.u32 4294901760, %v1466_v27 }
  0x23   :  { %v174_v16 = vsub.f32 %v1456_v19, %v173_v9  ;;  %v731_v21 = vsub.f32 %v1458_v20, %v730_v10  ;;  %v1551_v22 = vand.u32 4294901760, %v58_v14  ;;  %v1554_v23 = vsub.f32 %v68_v7, %v1537_v12  ;;  %p1392_p12 = pnand %p1391_p11, %p1385_p8 }
  0x24   :  { %v743_v28 = vsub.f32 %v1462_v25, %v742_v13  ;;  %v179_v31 = vand.u32 4294901760, %v1469_v29  ;;  %92 = vmatpush1.msra.mxu0 %v1525_v6  ;;  %v163_v32 = vand.u32 4294901760, %v162_v15  ;;  %v168_v37 = vsub.f32 %v1466_v27, %v167_v30 }
  0x25   :  { %v175_v33 = vand.u32 4294901760, %v174_v16  ;;  %v732_v34 = vand.u32 4294901760, %v731_v21  ;;  %v1563_v35 = vsub.f32 %v58_v14, %v1551_v22  ;;  %661 = vmatpush1.msra.mxu1 %v1537_v12  ;;  %v736_v39 = vand.u32 4294901760, %v1475_v41 }
  0x26   :  { %v744_v36 = vand.u32 4294901760, %v743_v28  ;;  %v180_v38 = vsub.f32 %v1469_v29, %v179_v31  ;;  %v748_v46 = vand.u32 4294901760, %v1477_v42  ;;  %v185_v51 = vand.u32 4294901760, %v1479_v43 }
  0x27   :  { %v1241_v44 = vpack.c.bf16 %v175_v33, %v163_v32  ;;  %v1574_v45 = vand.u32 4294901760, %v1563_v35  ;;  %v169_v55 = vand.u32 4294901760, %v168_v37  ;;  %v737_v59 = vsub.f32 %v1475_v41, %v736_v39 }
  0x28   :  { %v1289_v53 = vpack.c.bf16 %v744_v36, %v732_v34  ;;  %v181_v56 = vand.u32 4294901760, %v180_v38  ;;  %v749_v2 = vsub.f32 %v1477_v42, %v748_v46  ;;  %v186_v7 = vsub.f32 %v1479_v43, %v185_v51 }
  0x29   :  { %1242 = vmatprep.subr.bf16.mxu0 %v1241_v44  ;;  %v151_v60 = vsub.f32 %v1563_v35, %v1574_v45  ;;  %v197_v14 = vand.u32 4294901760, %v1483_v48  ;;  %v738_v16 = vand.u32 4294901760, %v737_v59  ;;  %v1761_v21 = vand.u32 4294901760, %v1487_v50 }
  0x2a   :  { %1290 = vmatprep.subr.bf16.mxu1 %v1289_v53  ;;  %v1243_v15 = vpack.c.bf16 %v181_v56, %v169_v55  ;;  %v1762_v28 = vand.u32 4294901760, %v1493_v52  ;;  %v750_v33 = vand.u32 4294901760, %v749_v2  ;;  %v187_v34 = vand.u32 4294901760, %v186_v7 }
  0x2b   :  { %v152_v32 = vand.u32 4294901760, %v151_v60  ;;  %v198_v36 = vsub.f32 %v1483_v48, %v197_v14  ;;  %v755_v37 = vsub.f32 %v1487_v50, %v1761_v21  ;;  %v191_v44 = vand.u32 4294901760, %v1495_v54 }
  0x2c   :  { %v767_v38 = vsub.f32 %v1493_v52, %v1762_v28  ;;  %v1763_v53 = vand.u32 4294901760, %v1508_v62  ;;  %v1291_v55 = vpack.c.bf16 %v750_v33, %v738_v16  ;;  %v1765_v59 = vand.u32 4294901760, %v1510_v63 }
  0x2d   :  { %153 = vmatmul.mubr.f32.vlgmr.msra.gmra.mrb[0].mxu0 %v152_v32  ;;  %722 = vmatmul.mubr.f32.vlgmr.msra.gmra.mrb[0].mxu1 %v152_v32  ;;  %v199_v56 = vand.u32 4294901760, %v198_v36  ;;  %v1764_v60 = vand.u32 4294901760, %v1520_v4  ;;  %v756_v2 = vand.u32 4294901760, %v755_v37  ;;  %v192_v21 = vsub.f32 %v1495_v54, %v191_v44 }
  0x2e   :  { %1244 = vmatpush1.bf16.msra.mxu0 %v1243_v15  ;;  %v768_v7 = vand.u32 4294901760, %v767_v38  ;;  %v204_v28 = vsub.f32 %v1508_v62, %v1763_v53  ;;  %273 = vmatprep.mubr.f32.mxu0 %v1413_v0  ;;  %v761_v32 = vsub.f32 %v1510_v63, %v1765_v59  ;;  %v1620_v33 = vsub.f32 %v1500_v57, %v1513_v1 }
  0x2f   :  { %1292 = vmatpush1.bf16.msra.mxu1 %v1291_v55  ;;  %v1245_v16 = vpack.c.bf16 %v199_v56, %v187_v34  ;;  %v773_v15 = vsub.f32 %v1520_v4, %v1764_v60  ;;  %v193_v37 = vand.u32 4294901760, %v192_v21  ;;  %v1624_v53 = vsub.f32 %v1503_v58, %v1523_v5  ;;  %842 = vmatprep.mubr.f32.mxu1 %v1413_v0 }
  0x30   :  { %v1293_v36 = vpack.c.bf16 %v768_v7, %v756_v2  ;;  %v205_v38 = vand.u32 4294901760, %v204_v28  ;;  %v762_v34 = vand.u32 4294901760, %v761_v32  ;;  %v209_v56 = vand.u32 4294901760, %v1620_v33 }
  0x31   :  { %1246 = vmatprep.subr.bf16.mxu0 %v1245_v16  ;;  %v774_v55 = vand.u32 4294901760, %v773_v15  ;;  %v215_v60 = vand.u32 4294901760, %v1535_v11  ;;  %v778_v57 = vand.u32 4294901760, %v1624_v53  ;;  %v784_v21 = vand.u32 4294901760, %v1554_v23 }
  0x32   :  { %1294 = vmatprep.subr.bf16.mxu1 %v1293_v36  ;;  %v1247_v59 = vpack.c.bf16 %v205_v38, %v193_v37  ;;  %v210_v58 = vsub.f32 %v1620_v33, %v209_v56  ;;  %v1249_v36 = vpack.c.bf16 %v1456_v19, %v1454_v18  ;;  %v1315_v18 = vpack.c.bf16 %v748_v46, %v736_v39 }
  0x33   :  { %v1295_v28 = vpack.c.bf16 %v774_v55, %v762_v34  ;;  %v216_v2 = vsub.f32 %v1535_v11, %v215_v60  ;;  %v779_v7 = vsub.f32 %v1624_v53, %v778_v57  ;;  %v785_v16 = vsub.f32 %v1554_v23, %v784_v21 }
  0x34   :  { %1248 = vmatpush1.bf16.msra.mxu0 %v1247_v59  ;;  %v211_v32 = vand.u32 4294901760, %v210_v58  ;;  %v1297_v34 = vpack.c.bf16 %v1462_v25, %v1458_v20  ;;  %v1251_v59 = vpack.c.bf16 %v1469_v29, %v1466_v27  ;;  %v1299_v55 = vpack.c.bf16 %v1477_v42, %v1475_v41 }
  0x35   :  { %1296 = vmatpush1.bf16.msra.mxu1 %v1295_v28  ;;  %v217_v15 = vand.u32 4294901760, %v216_v2  ;;  %v780_v37 = vand.u32 4294901760, %v779_v7  ;;  %v786_v38 = vand.u32 4294901760, %v785_v16  ;;  %v1253_v28 = vpack.c.bf16 %v1483_v48, %v1479_v43 }
  0x36   :  { %212 = vmatprep.subr.mxu0 %v211_v32  ;;  %v1301_v58 = vpack.c.bf16 %v1493_v52, %v1487_v50  ;;  %v1255_v2 = vpack.c.bf16 %v1508_v62, %v1495_v54  ;;  %v1303_v7 = vpack.c.bf16 %v1520_v4, %v1510_v63  ;;  %v1313_v16 = vpack.c.bf16 %v742_v13, %v730_v10 }
  0x37   :  { %781 = vmatprep.subr.mxu1 %v780_v37  ;;  %v1267_v32 = vpack.c.bf16 %v179_v31, %v167_v30  ;;  %v1269_v19 = vpack.c.bf16 %v197_v14, %v185_v51  ;;  %v1766_v20 = vand.u32 4294901760, %v1487_v50  ;;  %v1767_v25 = vand.u32 4294901760, %v1493_v52 }
  0x38   :  { %218 = vmatpush1.msra.mxu0 %v217_v15  ;;  %v1768_v29 = vand.u32 4294901760, %v1508_v62  ;;  %v1769_v42 = vand.u32 4294901760, %v1510_v63  ;;  %v1770_v43 = vand.u32 4294901760, %v1520_v4 }
  0x39   :  { %787 = vmatpush1.msra.mxu1 %v786_v38  ;;  %1250 = vmatprep.subr.bf16.mxu0 %v1249_v36  ;;  %v1317_v27 = vpack.c.bf16 %v1767_v25, %v1766_v20 }
  0x3a   :  { %1298 = vmatprep.subr.bf16.mxu1 %v1297_v34  ;;  %275 = vmatmul.mubr.f32.vlgmr.msra.gmra.mrb[0].mxu0 %v1551_v22  ;;  %v1271_v41 = vpack.c.bf16 %v1768_v29, %v191_v44  ;;  %v1319_v48 = vpack.c.bf16 %v1770_v43, %v1769_v42 }
  0x3b   :  { %1252 = vmatpush1.bf16.msra.mxu0 %v1251_v59  ;;  %844 = vmatmul.mubr.f32.vlgmr.msra.gmra.mrb[0].mxu1 %v1551_v22 }
  0x3c   :  { %1300 = vmatpush1.bf16.msra.mxu1 %v1299_v55  ;;  %1254 = vmatprep.subr.bf16.mxu0 %v1253_v28 }
  0x3d   :  { %1302 = vmatprep.subr.bf16.mxu1 %v1301_v58  ;;  %365 = vmatprep.mubr.f32.mxu0 %v1413_v0 }
  0x3e   :  { %934 = vmatprep.mubr.f32.mxu1 %v1413_v0 }
  0x3f   :  { %1256 = vmatpush1.bf16.msra.mxu0 %v1255_v2 }
  0x40   :  { %1304 = vmatpush1.bf16.msra.mxu1 %v1303_v7  ;;  %307 = vmatprep.subr.mxu0 %v1620_v33 }
  0x41   :  { %876 = vmatprep.subr.mxu1 %v1624_v53 }
  0x43   :  { %310 = vmatpush1.msra.mxu0 %v1535_v11 }
  0x44   :  { %879 = vmatpush1.msra.mxu1 %v1554_v23  ;;  %1258 = vmatprep.subr.bf16.mxu0 %v1452_v17 }
  0x45   :  { %1306 = vmatprep.subr.bf16.mxu1 %v1460_v24  ;;  %368 = vmatmul.mubr.f32.vlgmr.msra.gmra.mrb[0].mxu0 %v1563_v35 }
  0x46   :  { %1260 = vmatpush1.bf16.msra.mxu0 %v1464_v26  ;;  %937 = vmatmul.mubr.f32.vlgmr.msra.gmra.mrb[0].mxu1 %v1563_v35  ;;  %v1265_v35 = vpack.c.bf16 %v173_v9, %v161_v8 }
  0x47   :  { %1308 = vmatpush1.bf16.msra.mxu1 %v1473_v40  ;;  %1262 = vmatprep.subr.bf16.mxu0 %v1481_v47 }
  0x48   :  { %1310 = vmatprep.subr.bf16.mxu1 %v1485_v49  ;;  %448 = vmatprep.mubr.f32.mxu0 %v1413_v0 }
  0x49   :  { %1017 = vmatprep.mubr.f32.mxu1 %v1413_v0 }
  0x4a   :  { %1264 = vmatpush1.bf16.msra.mxu0 %v1506_v61 }
  0x4b   :  { %1312 = vmatpush1.bf16.msra.mxu1 %v1518_v3  ;;  %391 = vmatprep.subr.mxu0 %v1513_v1 }
  0x4c   :  { %960 = vmatprep.subr.mxu1 %v1523_v5 }
  0x4e   :  { %393 = vmatpush1.msra.mxu0 %v1525_v6 }
  0x4f   :  { %962 = vmatpush1.msra.mxu1 %v1537_v12  ;;  %1266 = vmatprep.subr.bf16.mxu0 %v1265_v35 }
  0x50   :  { %1314 = vmatprep.subr.bf16.mxu1 %v1313_v16  ;;  %452 = vmatmul.mubr.f32.vlgmr.msra.gmra.mrb[0].mxu0 %v1574_v45 }
  0x51   :  { %1268 = vmatpush1.bf16.msra.mxu0 %v1267_v32  ;;  %1021 = vmatmul.mubr.f32.vlgmr.msra.gmra.mrb[0].mxu1 %v1574_v45 }
  0x52   :  { %1316 = vmatpush1.bf16.msra.mxu1 %v1315_v18  ;;  %1270 = vmatprep.subr.bf16.mxu0 %v1269_v19 }
  0x53   :  { %1318 = vmatprep.subr.bf16.mxu1 %v1317_v27  ;;  %552 = vmatprep.mubr.f32.mxu0 %v1413_v0 }
  0x54   :  { %1121 = vmatprep.mubr.f32.mxu1 %v1413_v0 }
  0x55   :  { %1272 = vmatpush1.bf16.msra.mxu0 %v1271_v41 }
  0x56   :  { %1320 = vmatpush1.bf16.msra.mxu1 %v1319_v48  ;;  %493 = vmatprep.subr.mxu0 %v209_v56 }
  0x57   :  { %1062 = vmatprep.subr.mxu1 %v778_v57 }
  0x59   :  { %497 = vmatpush1.msra.mxu0 %v215_v60 }
  0x5a   :  { %1066 = vmatpush1.msra.mxu1 %v784_v21  ;;  %1274 = vmatprep.subr.bf16.mxu0 %v1452_v17 }
  0x5b   :  { %1322 = vmatprep.subr.bf16.mxu1 %v1460_v24  ;;  %554 = vmatmul.mubr.f32.vlgmr.msra.gmra.mrb[0].mxu0 %v1551_v22 }
  0x5c   :  { %1276 = vmatpush1.bf16.msra.mxu0 %v1464_v26  ;;  %1123 = vmatmul.mubr.f32.vlgmr.msra.gmra.mrb[0].mxu1 %v1551_v22 }
  0x5d   :  { %1324 = vmatpush1.bf16.msra.mxu1 %v1473_v40  ;;  %1278 = vmatprep.subr.bf16.mxu0 %v1481_v47 }
  0x5e   :  { %1326 = vmatprep.subr.bf16.mxu1 %v1485_v49  ;;  %634 = vmatprep.mubr.f32.mxu0 %v1413_v0 }
  0x5f   :  { %1203 = vmatprep.mubr.f32.mxu1 %v1413_v0 }
  0x60   :  { %1280 = vmatpush1.bf16.msra.mxu0 %v1506_v61 }
  0x61   :  { %1328 = vmatpush1.bf16.msra.mxu1 %v1518_v3  ;;  %577 = vmatprep.subr.mxu0 %v1513_v1 }
  0x62   :  { %1146 = vmatprep.subr.mxu1 %v1523_v5 }
  0x64   :  { %579 = vmatpush1.msra.mxu0 %v1525_v6 }
  0x65   :  { %1148 = vmatpush1.msra.mxu1 %v1537_v12  ;;  %636 = vmatmul.mubr.f32.vlgmr.msra.gmra.mrb[0].mxu0 %v1551_v22 }
  0x66   :  { %1205 = vmatmul.mubr.f32.vlgmr.msra.gmra.mrb[0].mxu1 %v1551_v22 }
  0x9b   :  { %v54_v17 = vpop.permute.xlu0 %53 }
 0x138   :  { %v637_v0 = vpop.f32.mrb[0].mxu0 }
 0x139   :  { %v1329_v24 = vadd.f32 %v637_v0, %v54_v17  ;;  %v1206_v26 = vpop.f32.mrb[0].mxu1  ;;  %v639_v40 = vpop.f32.mrb[1].mxu0 }
 0x13a   :  { %v1331_v47 = vadd.f32 %v1206_v26, %v54_v17  ;;  %v1330_v49 = vadd.f32 %v639_v40, %v54_v17  ;;  %v1208_v50 = vpop.f32.mrb[1].mxu1 }
 0x13b   :  { %1211 = vst [vmem:[#allocation5] sm:$0xff] %v1329_v24  ;;  %v1332_v52 = vadd.f32 %v1208_v50, %v54_v17 }
 0x13c   :  { %1214 = vst [vmem:[#allocation5 + $0x10] sm:$0xff] %v1331_v47  ;;  %1212 = vst [vmem:[#allocation5 + $0x8] sm:$0xff] %v1330_v49 }
 0x13d   :  { %1215 = vst [vmem:[#allocation5 + $0x18] sm:$0xff] %v1332_v52 }
 0x13e   :  { %1395 = shalt.err (!%p1392_p12)
}
 0x13f   :  { %s1396_s5 = scalar_lea.hbm %s1760_s3, 512 }
 0x140   :  { %p1397_p13 = scmp.ne.s32.totalorder %s1760_s3, %s1396_s5  ;;  %p1400_p0 = scmp.lt.u32.totalorder %s1396_s5, %s1760_s3 }
 0x142   :  { %p1402_p1 = pnand %p1400_p0, %p1397_p13 }
 0x144   :  { %1405 = shalt.err (!%p1402_p1)
}
 0x145   :  { %s1416_s10 = smov 256   ;;  %s1417_s11 = smov 16  }
 0x146   :  { %1227 = dma.vmem_to_hbm [thread:$0]  %s1222_s28, 512, %s1760_s3, [#allocation4], %s1416_s10, %s1416_s10, %s1417_s11  }
 0x147   :  { %1408 = dma.done.wait [#allocation4], 512  }
 0x148   :  { %1409 = vsyncadd [#allocation4], 4294966784 }
 0x149   :  { %1231 = vsyncpa [#allocation3], 1 }
 0x14a   :  { %1232 = vsyncpa [#allocation4], 1 }

</bundles_post_ra>
